<compile_context>
chip_gen: v7x
topology: tpu7x:2x2x1
jax: 0.10.0
libtpu: 0.0.40
codegen_flags: <defaults>
</compile_context>

<pallas_src>
import functools

import jax
import jax.numpy as jnp
from jax.experimental import pallas as pl
from jax.experimental.pallas import tpu as pltpu

_LANE = 128


def _round_up(v, m):
    return ((v + m - 1) // m) * m


def _round_down(v, m):
    return (v // m) * m


def _vmem_capacity_bytes():
    try:
        return int(pltpu.get_tpu_info().vmem_capacity_bytes)
    except Exception:
        return 64 << 20  # conservative (v7x-sized) fallback


# ---------------------------------------------------------------------------
# Fused single-pass kernel (main path)
# ---------------------------------------------------------------------------

def _pool_sum_f32(x_ref):
    """Sum over the lane (spatial) axis of a (TB, C, HWp) ref, accumulating in
    f32 slab-by-slab (no full-tile upcast of sub-32-bit inputs)."""
    hw = x_ref.shape[-1]
    if hw % _LANE != 0 or hw <= _LANE:
        return jnp.sum(x_ref[...].astype(jnp.float32), axis=-1)
    n_slabs = hw // _LANE
    acc = x_ref[:, :, 0:_LANE].astype(jnp.float32)
    if n_slabs <= 32:
        for k in range(1, n_slabs):                       # aligned VPU adds
            acc = acc + x_ref[:, :, k * _LANE:(k + 1) * _LANE].astype(jnp.float32)
    else:
        def body(k, a):
            start = pl.multiple_of(k * _LANE, _LANE)
            return a + x_ref[:, :, pl.ds(start, _LANE)].astype(jnp.float32)
        acc = jax.lax.fori_loop(1, n_slabs, body, acc)
    return jnp.sum(acc, axis=-1)                          # one cross-lane reduce


def _cse_fused_kernel(x_ref, w1t_ref, b1_ref, w2t_ref, b2_ref, o_ref, *, inv_hw):
    # x_ref:  (TB, C, HWp)   w1t_ref: (C, Cr)   b1_ref: (1, Cr)
    # w2t_ref: (Cr, C)       b2_ref: (1, C)     o_ref: (TB, C, HWp)
    pooled = _pool_sum_f32(x_ref) * inv_hw                           # (TB, C) f32

    # Conv1x1(C -> Cr) + ReLU  and  Conv1x1(Cr -> C) + Sigmoid, dense dots.
    h = jnp.dot(pooled, w1t_ref[...], preferred_element_type=jnp.float32)
    h = jnp.maximum(h + b1_ref[...], 0.0)                            # (TB, Cr)
    s = jnp.dot(h, w2t_ref[...], preferred_element_type=jnp.float32)
    s = jax.nn.sigmoid(s + b2_ref[...])                              # (TB, C)

    # Gate in the native dtype; single unmasked lane-dense store.
    o_ref[...] = x_ref[...] * s.astype(o_ref.dtype)[:, :, None]


# ---------------------------------------------------------------------------
# Two-pass fallback (feature map too large for one VMEM block)
# ---------------------------------------------------------------------------

def _pool_kernel(x_ref, o_ref, *, inv_hw, hw_valid, thw):
    j = pl.program_id(1)

    @pl.when(j == 0)
    def _():
        o_ref[...] = jnp.zeros_like(o_ref)

    xv = x_ref[...].astype(jnp.float32)                              # (TR, THW)
    if hw_valid % thw != 0:
        lane = jax.lax.broadcasted_iota(jnp.int32, xv.shape, 1)
        xv = jnp.where(j * thw + lane < hw_valid, xv, 0.0)
    o_ref[...] += jnp.sum(xv, axis=-1, keepdims=True)

    @pl.when(j == pl.num_programs(1) - 1)
    def _():
        o_ref[...] = o_ref[...] * inv_hw


def _scale_kernel(x_ref, s_ref, o_ref):
    o_ref[...] = x_ref[...] * s_ref[...].astype(o_ref.dtype)


def _cse_two_pass(x, w1, b1, w2, b2, x_block_budget, vmem_cap):
    N, C, H, W = x.shape
    HW = H * W
    NC = N * C
    itemsize = jnp.dtype(x.dtype).itemsize
    x2 = x.reshape(NC, HW)

    budget_elems = max(8 * _LANE, x_block_budget // itemsize)
    THW = min(_round_up(HW, _LANE),
              max(_LANE, _round_down(budget_elems // 8, _LANE)))
    if NC <= 8:
        TR = NC
    else:
        TR = max(8, _round_down(min(budget_elems // THW, _round_up(NC, 8)), 8))
    grid_r = pl.cdiv(NC, TR)
    grid_hw = pl.cdiv(HW, THW)

    block_bytes = TR * THW * itemsize
    vmem_limit = int(min(max(6 * block_bytes + (4 << 20), 16 << 20),
                         vmem_cap - (8 << 20)))

    # Pass 1: global average pool -> (NC, 1) f32.
    pooled = pl.pallas_call(
        functools.partial(_pool_kernel, inv_hw=1.0 / HW, hw_valid=HW, thw=THW),
        out_shape=jax.ShapeDtypeStruct((NC, 1), jnp.float32),
        grid_spec=pltpu.PrefetchScalarGridSpec(
            num_scalar_prefetch=0,
            grid=(grid_r, grid_hw),
            in_specs=[pl.BlockSpec((TR, THW), lambda i, j: (i, j))],
            out_specs=pl.BlockSpec((TR, 1), lambda i, j: (i, 0)),
        ),
        compiler_params=pltpu.CompilerParams(
            dimension_semantics=("parallel", "arbitrary"),
            vmem_limit_bytes=vmem_limit,
        ),
        cost_estimate=pl.CostEstimate(
            flops=NC * HW, transcendentals=0,
            bytes_accessed=NC * HW * itemsize + NC * 4),
    )(x2)

    # Tiny per-image gate (O(N*C*Cr) flops) stays in plain XLA.
    pooled = pooled.reshape(N, C)
    h = jnp.maximum(pooled @ w1.astype(jnp.float32).T
                    + b1.astype(jnp.float32)[None, :], 0.0)
    s = jax.nn.sigmoid(h @ w2.astype(jnp.float32).T
                       + b2.astype(jnp.float32)[None, :])            # (N, C)
    s2 = s.reshape(NC, 1)

    # Pass 2: scale x by the per-(batch, channel) gate.
    out = pl.pallas_call(
        _scale_kernel,
        out_shape=jax.ShapeDtypeStruct((NC, HW), x.dtype),
        grid_spec=pltpu.PrefetchScalarGridSpec(
            num_scalar_prefetch=0,
            grid=(grid_r, grid_hw),
            in_specs=[pl.BlockSpec((TR, THW), lambda i, j: (i, j)),
                      pl.BlockSpec((TR, 1), lambda i, j: (i, 0))],
            out_specs=pl.BlockSpec((TR, THW), lambda i, j: (i, j)),
        ),
        compiler_params=pltpu.CompilerParams(
            dimension_semantics=("parallel", "parallel"),
            vmem_limit_bytes=vmem_limit,
        ),
        cost_estimate=pl.CostEstimate(
            flops=NC * HW, transcendentals=0,
            bytes_accessed=2 * NC * HW * itemsize),
    )(x2, s2)
    return out.reshape(N, C, H, W)


# ---------------------------------------------------------------------------
# Wrapper
# ---------------------------------------------------------------------------

def cse_block(x, w1, b1, w2, b2, *, x_block_budget=None, force_two_pass=False):
    """Channel squeeze-and-excitation.  x: (N, C, H, W) -> (N, C, H, W)."""
    N, C, H, W = x.shape
    Cr = w1.shape[0]
    HW = H * W
    itemsize = jnp.dtype(x.dtype).itemsize

    vmem_cap = _vmem_capacity_bytes()
    if x_block_budget is None:
        # ~12.8 MiB per x block on 128 MiB VMEM parts (v5e/v6e), ~6.4 MiB on v7x.
        x_block_budget = min(16 << 20, max(2 << 20, vmem_cap // 10))

    HWp = HW if HW % _LANE == 0 else _round_up(HW, _LANE)   # lane-dense stores
    C_pad = _round_up(C, 8)                                 # VMEM sublane padding
    per_batch_vmem = C_pad * HWp * itemsize

    if force_two_pass or per_batch_vmem > x_block_budget:
        return _cse_two_pass(x, w1, b1, w2, b2, x_block_budget, vmem_cap)

    # --- batch tile ---------------------------------------------------------
    TB = max(1, min(N, x_block_budget // per_batch_vmem))
    if N >= 2:
        TB = min(TB, (N + 1) // 2)      # >= 2 grid steps: v7x megacore + overlap
    grid_b = pl.cdiv(N, TB)             # partial last block allowed

    # --- operands -----------------------------------------------------------
    x3 = x.reshape(N, C, HW)
    if HWp != HW:
        x3 = jnp.pad(x3, ((0, 0), (0, 0), (0, HWp - HW)))   # zeros: pool-safe
    w1t = w1.astype(jnp.float32).T                          # (C, Cr)
    w2t = w2.astype(jnp.float32).T                          # (Cr, C)
    b1r = b1.astype(jnp.float32).reshape(1, Cr)
    b2r = b2.astype(jnp.float32).reshape(1, C)

    block_vmem = TB * per_batch_vmem
    w_bytes = 4 * int(w1t.size + w2t.size + b1r.size + b2r.size)
    need = 4 * block_vmem + 2 * w_bytes + (4 << 20)
    vmem_limit = int(min(max(need, 32 << 20), vmem_cap - (8 << 20)))

    cost = pl.CostEstimate(
        flops=2 * N * C * HW + 4 * N * C * Cr,
        transcendentals=N * C,
        bytes_accessed=2 * N * C * HW * itemsize + w_bytes)

    out = pl.pallas_call(
        functools.partial(_cse_fused_kernel, inv_hw=1.0 / HW),
        out_shape=jax.ShapeDtypeStruct((N, C, HWp), x.dtype),
        grid_spec=pltpu.PrefetchScalarGridSpec(
            num_scalar_prefetch=0,
            grid=(grid_b,),
            in_specs=[
                pl.BlockSpec((TB, C, HWp), lambda i: (i, 0, 0)),
                pl.BlockSpec((C, Cr), lambda i: (0, 0)),
                pl.BlockSpec((1, Cr), lambda i: (0, 0)),
                pl.BlockSpec((Cr, C), lambda i: (0, 0)),
                pl.BlockSpec((1, C), lambda i: (0, 0)),
            ],
            out_specs=pl.BlockSpec((TB, C, HWp), lambda i: (i, 0, 0)),
        ),
        compiler_params=pltpu.CompilerParams(
            dimension_semantics=("parallel",),
            vmem_limit_bytes=vmem_limit,
        ),
        cost_estimate=cost,
    )(x3, w1t, b1r, w2t, b2r)

    if HWp != HW:
        out = out[:, :, :HW]
    return out.reshape(N, C, H, W)


# ---------------------------------------------------------------------------
# Reference + test
# ---------------------------------------------------------------------------

def _reference(x, w1, b1, w2, b2):
    pooled = jnp.mean(x, axis=(2, 3))                               # (N, C)
    h = jnp.maximum(pooled @ w1.T + b1[None, :], 0.0)               # (N, Cr)
    s = jax.nn.sigmoid(h @ w2.T + b2[None, :])                      # (N, C)
    return s[:, :, None, None] * x


if __name__ == "__main__":
    key = jax.random.PRNGKey(0)

    def make_case(k, N, C, H, W, r):
        Cr = max(1, C // r)
        ks = jax.random.split(k, 5)
        x = jax.random.normal(ks[0], (N, C, H, W), dtype=jnp.float32)
        w1 = 0.1 * jax.random.normal(ks[1], (Cr, C), dtype=jnp.float32)
        b1 = 0.1 * jax.random.normal(ks[2], (Cr,), dtype=jnp.float32)
        w2 = 0.1 * jax.random.normal(ks[3], (C, Cr), dtype=jnp.float32)
        b2 = 0.1 * jax.random.normal(ks[4], (C,), dtype=jnp.float32)
        return x, w1, b1, w2, b2

    k1, k2 = jax.random.split(key)

    # Case 1: module-default small shape -> fused single-pass path.
    x, w1, b1, w2, b2 = make_case(k1, N=2, C=4, H=16, W=16, r=2)
    y = jax.block_until_ready(cse_block(x, w1, b1, w2, b2))
    y_ref = _reference(x, w1, b1, w2, b2)
    assert jnp.allclose(y, y_ref, atol=1e-5, rtol=1e-5), "fused path mismatch"

    # Case 2: same inputs through the guarded two-pass fallback
    # (huge-feature-map path, forced with a tiny block budget).
    y2 = jax.block_until_ready(
        cse_block(x, w1, b1, w2, b2, x_block_budget=4096, force_two_pass=True))
    assert jnp.allclose(y2, y_ref, atol=1e-5, rtol=1e-5), "two-pass path mismatch"

    # Case 3: non-128-multiple spatial size and N not divisible by the batch
    # tile (exercises lane padding + cdiv grid with a partial last block).
    x3, w13, b13, w23, b23 = make_case(k2, N=3, C=8, H=10, W=10, r=2)
    y3 = jax.block_until_ready(cse_block(x3, w13, b13, w23, b23))
    y3_ref = _reference(x3, w13, b13, w23, b23)
    assert jnp.allclose(y3, y3_ref, atol=1e-5, rtol=1e-5), "padded/partial mismatch"

    print("KERNEL_OK")
</pallas_src>

<mosaic_0001>
module attributes {stable_mosaic.version = 11 : i64} {
  func.func @_cse_fused_kernel(%arg0: i32, %arg1: memref<1x4x256xf32, #tpu.memory_space<vmem>>, %arg2: memref<4x2xf32, #tpu.memory_space<vmem>>, %arg3: memref<1x2xf32, #tpu.memory_space<vmem>>, %arg4: memref<2x4xf32, #tpu.memory_space<vmem>>, %arg5: memref<1x4xf32, #tpu.memory_space<vmem>>, %arg6: memref<1x4x256xf32, #tpu.memory_space<vmem>>) attributes {dimension_semantics = [#tpu.dimension_semantics<parallel>], iteration_bounds = array<i64: 2>, scalar_prefetch = 0 : i64, scratch_operands = 0 : i64, tpu.core_type = #tpu.core_type<tc>, window_params = [{transform_indices = @transform_0, window_bounds = array<i64: 1, 4, 256>}, {pipeline_mode = #tpu.pipeline_mode<synchronous>, transform_indices = @transform_1, window_bounds = array<i64: 4, 2>}, {pipeline_mode = #tpu.pipeline_mode<synchronous>, transform_indices = @transform_2, window_bounds = array<i64: 1, 2>}, {pipeline_mode = #tpu.pipeline_mode<synchronous>, transform_indices = @transform_3, window_bounds = array<i64: 2, 4>}, {pipeline_mode = #tpu.pipeline_mode<synchronous>, transform_indices = @transform_4, window_bounds = array<i64: 1, 4>}, {transform_indices = @transform_5, window_bounds = array<i64: 1, 4, 256>}]} {
    %c0 = arith.constant 0 : index
    %c0_0 = arith.constant 0 : index
    %c0_1 = arith.constant 0 : index
    %0 = vector.load %arg1[%c0, %c0_0, %c0_1] : memref<1x4x256xf32, #tpu.memory_space<vmem>>, vector<1x4x128xf32>
    %c0_2 = arith.constant 0 : index
    %c0_3 = arith.constant 0 : index
    %c128 = arith.constant 128 : index
    %1 = vector.load %arg1[%c0_2, %c0_3, %c128] : memref<1x4x256xf32, #tpu.memory_space<vmem>>, vector<1x4x128xf32>
    %2 = arith.addf %0, %1 : vector<1x4x128xf32>
    %cst = arith.constant dense<0.000000e+00> : vector<1x4xf32>
    %3 = vector.multi_reduction <add>, %2, %cst [2] : vector<1x4x128xf32> to vector<1x4xf32>
    %cst_4 = arith.constant 3.906250e-03 : f32
    %4 = vector.broadcast %cst_4 : f32 to vector<1x4xf32>
    %5 = arith.mulf %3, %4 : vector<1x4xf32>
    %c0_5 = arith.constant 0 : index
    %c0_6 = arith.constant 0 : index
    %6 = vector.load %arg2[%c0_5, %c0_6] : memref<4x2xf32, #tpu.memory_space<vmem>>, vector<4x2xf32>
    %cst_7 = arith.constant dense<0.000000e+00> : vector<1x2xf32>
    %7 = tpu.matmul %5, %6, %cst_7 {dimension_numbers = #tpu.dot_dimension_numbers<[1], [0], [0], [1], [0, 0, 1, 1], [], []>} : vector<1x4xf32>, vector<4x2xf32>, vector<1x2xf32> -> vector<1x2xf32>
    %c0_8 = arith.constant 0 : index
    %c0_9 = arith.constant 0 : index
    %8 = vector.load %arg3[%c0_8, %c0_9] : memref<1x2xf32, #tpu.memory_space<vmem>>, vector<1x2xf32>
    %9 = arith.addf %7, %8 : vector<1x2xf32>
    %cst_10 = arith.constant 0.000000e+00 : f32
    %10 = vector.broadcast %cst_10 : f32 to vector<1x2xf32>
    %11 = arith.maximumf %9, %10 : vector<1x2xf32>
    %c0_11 = arith.constant 0 : index
    %c0_12 = arith.constant 0 : index
    %12 = vector.load %arg4[%c0_11, %c0_12] : memref<2x4xf32, #tpu.memory_space<vmem>>, vector<2x4xf32>
    %cst_13 = arith.constant dense<0.000000e+00> : vector<1x4xf32>
    %13 = tpu.matmul %11, %12, %cst_13 {dimension_numbers = #tpu.dot_dimension_numbers<[1], [0], [0], [1], [0, 0, 1, 1], [], []>} : vector<1x2xf32>, vector<2x4xf32>, vector<1x4xf32> -> vector<1x4xf32>
    %c0_14 = arith.constant 0 : index
    %c0_15 = arith.constant 0 : index
    %14 = vector.load %arg5[%c0_14, %c0_15] : memref<1x4xf32, #tpu.memory_space<vmem>>, vector<1x4xf32>
    %15 = arith.addf %13, %14 : vector<1x4xf32>
    %16 = arith.negf %15 : vector<1x4xf32>
    %17 = math.exp %16 : vector<1x4xf32>
    %cst_16 = arith.constant 1.000000e+00 : f32
    %18 = vector.broadcast %cst_16 : f32 to vector<1x4xf32>
    %19 = arith.addf %18, %17 : vector<1x4xf32>
    %20 = arith.divf %18, %19 : vector<1x4xf32>
    %c0_17 = arith.constant 0 : index
    %c0_18 = arith.constant 0 : index
    %c0_19 = arith.constant 0 : index
    %21 = vector.load %arg1[%c0_17, %c0_18, %c0_19] : memref<1x4x256xf32, #tpu.memory_space<vmem>>, vector<1x4x256xf32>
    %22 = vector.shape_cast %20 : vector<1x4xf32> to vector<1x4x1xf32>
    %23 = vector.broadcast %22 : vector<1x4x1xf32> to vector<1x4x256xf32>
    %24 = arith.mulf %21, %23 : vector<1x4x256xf32>
    %c0_20 = arith.constant 0 : index
    %c0_21 = arith.constant 0 : index
    %c0_22 = arith.constant 0 : index
    %25 = vector.load %arg6[%c0_20, %c0_21, %c0_22] : memref<1x4x256xf32, #tpu.memory_space<vmem>>, vector<1x4x256xf32>
    tpu.vector_store %arg6[%c0_20, %c0_21, %c0_22], %24 {strides = array<i32>} : memref<1x4x256xf32, #tpu.memory_space<vmem>>, vector<1x4x256xf32>,
    return
  }
  func.func @transform_0(%arg0: i32) -> (i32, i32, i32) {
    %c0_i32 = arith.constant 0 : i32
    %c0_i32_0 = arith.constant 0 : i32
    %c0_i32_1 = arith.constant 0 : i32
    return %arg0, %c0_i32, %c0_i32_0 : i32, i32, i32
  }
  func.func @transform_1(%arg0: i32) -> (i32, i32) {
    %c0_i32 = arith.constant 0 : i32
    %c0_i32_0 = arith.constant 0 : i32
    %c0_i32_1 = arith.constant 0 : i32
    return %c0_i32, %c0_i32_0 : i32, i32
  }
  func.func @transform_2(%arg0: i32) -> (i32, i32) {
    %c0_i32 = arith.constant 0 : i32
    %c0_i32_0 = arith.constant 0 : i32
    %c0_i32_1 = arith.constant 0 : i32
    return %c0_i32, %c0_i32_0 : i32, i32
  }
  func.func @transform_3(%arg0: i32) -> (i32, i32) {
    %c0_i32 = arith.constant 0 : i32
    %c0_i32_0 = arith.constant 0 : i32
    %c0_i32_1 = arith.constant 0 : i32
    return %c0_i32, %c0_i32_0 : i32, i32
  }
  func.func @transform_4(%arg0: i32) -> (i32, i32) {
    %c0_i32 = arith.constant 0 : i32
    %c0_i32_0 = arith.constant 0 : i32
    %c0_i32_1 = arith.constant 0 : i32
    return %c0_i32, %c0_i32_0 : i32, i32
  }
  func.func @transform_5(%arg0: i32) -> (i32, i32, i32) {
    %c0_i32 = arith.constant 0 : i32
    %c0_i32_0 = arith.constant 0 : i32
    %c0_i32_1 = arith.constant 0 : i32
    return %arg0, %c0_i32, %c0_i32_0 : i32, i32, i32
  }
}

</mosaic_0001>

<bundles_post_ra>
// kernel: tpu_custom_call.1
= control target key start
LH: loop header
LB: loop body
LE: loop exit
PB: predicated region body
PF: predicated region fallthrough
CT: control target
= control target key end

     0   :  { %10 = vsyncpa [#allocation3], 0  ;;  %s928_s0 = inlined_call_operand.hbm [shape: f32[2,4,256], index: 0, kind: input, shape index: {}]   ;;  %s929_s1 = inlined_call_operand.vmem [shape: f32[4,2], index: 1, kind: input, shape index: {}]   ;;  %s930_s2 = inlined_call_operand.vmem [shape: f32[1,2], index: 2, kind: input, shape index: {}]   ;;  %s931_s3 = inlined_call_operand.vmem [shape: f32[2,4], index: 3, kind: input, shape index: {}]   ;;  %s932_s4 = inlined_call_operand.vmem [shape: f32[1,4], index: 4, kind: input, shape index: {}]   ;;  %s933_s5 = inlined_call_operand.hbm [shape: f32[2,4,256], index: 5, kind: output, shape index: {}]  }
   0x1   :  { %12 = vsyncpa [#allocation3 + $0x1], 0 }
   0x2   :  { %13 = vsyncpa [#allocation4], 0 }
   0x3   :  { %15 = vsyncpa [#allocation4 + $0x1], 0  ;;  %s746_s18 = smov 0   ;;  %s748_s19 = smov 0  }
   0x4   :  { %s750_s20 = smov 0   ;;  %s752_s21 = smov 0  }
   0x5 LB: > { %s767_s22 = sadd.s32 4294967295, %s709_s21   ;;  %s525_s23 = sadd.s32 4294967294, %s709_s21   ;;  %s709_s21 = sphi %s752_s21, %s948_s21   ;;  %s705_s20 = sphi %s750_s20, %s947_s20   ;;  %s701_s19 = sphi %s748_s19, %s946_s19   ;;  %s697_s18 = sphi %s746_s18, %s945_s18  }
   0x6   : > { %s771_s24 = sadd.s32 1, %s709_s21   ;;  %s28_s25 = sadd.s32 1, %s705_s20 }
   0x7   : > { %s25_s26 = ssub.s32 %s709_s21, %s771_s24  ;;  %p35_p0 = scmp.ne.s32.totalorder %s705_s20, %s701_s19 }
   0x8   : > { %p26_p1 = scmp.eq.s32.totalorder %s25_s26, 0  ;;  %p36_p2 = scmp.eq.s32.totalorder %s709_s21, 0 }
   0x9   : > { %p41_p3 = scmp.ne.s32.totalorder %s701_s19, %s697_s18  ;;  %p42_p4 = scmp.eq.s32.totalorder %s767_s22, 0 }
   0xa   : > { %s783_s27 = scalar_select %p26_p1, %s705_s20, %s28_s25  }
   0xb   : > { %p785_p5 = por %p36_p2, %p35_p0  ;;  %p789_p6 = por %p42_p4, %p41_p3 }
   0xc   : > { %p149_p7 = scmp.eq.s32.totalorder %s767_s22, 1  ;;  %p155_p8 = scmp.eq.s32.totalorder %s525_s23, 1 }
   0xd   : > { %p572_p10 = scmp.lt.s32.totalorder %s709_s21, 2  ;;  %s187_s7 = sand.u32 1, %s705_s20  }
   0xe   : > { %p796_p11 = por %p149_p7, %p35_p0  ;;  %p800_p12 = por %p155_p8, %p41_p3 }
   0xf   : > { %s544_s8 = sshll.u32 %s709_s21, 7  ;;  %s528_s9 = sshll.u32 %s187_s7, 3 }
  0x10   : > { %s937_s30 = scalar_select %p796_p11, 1, 0 }
  0x11   : > { %s938_s6 = scalar_select %p800_p12, 1, 0 }
  0x12   : > { %s809_s12 = scalar_lea.hbm %s928_s0, %s544_s8  ;;  %s191_s13 = scalar_lea.vmem [#allocation2], %s528_s9 }
  0x13   : > { %s199_s14 = sshll.u32 %s191_s13, 4  ;;  %p813_p13 = pnand %p572_p10, %p785_p5  ;;  %s817_s14 = int_to_ptr.vmem [resolvable:$true] %s199_s14 }
  0x14   : > { %s188_s16 = scalar_lea.sflag [#allocation3], %s187_s7  ;;  %s613_s17 = scalar_lea.hbm %s809_s12, 128 }
  0x15   : > { %p614_p2 = scmp.ne.s32.totalorder %s809_s12, %s613_s17  ;;  %p615_p3 = pneg %p813_p13 }
  0x16   : > { %s618_s26 = scalar_lea.hbm %s928_s0, 256  ;;  %p619_p5 = scmp.lt.u32.totalorder %s809_s12, %s928_s0 }
  0x17   : > { %p616_p4 = pnand %p615_p3, %p614_p2  ;;  %p620_p8 = scmp.lt.u32.totalorder %s618_s26, %s613_s17 }
  0x18   : > { %p622_p9 = scmp.lt.u32.totalorder %s613_s17, %s809_s12 }
  0x19   : > { %p617_p7 = pneg %p616_p4  ;;  %p621_p10 = por %p620_p8, %p619_p5 }
  0x1b   : > { %p623_p0 = por %p622_p9, %p621_p10 }
  0x1d   : > { %p624_p1 = pnand %p623_p0, %p617_p7 }
  0x1f   : > { %627 = shalt.err (!%p624_p1)
}
  0x20   : > { %s628_s7 = scalar_lea.vmem %s817_s14, 128  ;;  %s711_s9 = smov [#allocation2]  }
  0x21   : > { %p629_p2 = scmp.ne.s32.totalorder %s817_s14, %s628_s7  ;;  %s633_s10 = sshll.u32 %s711_s9, 4  ;;  %s634_s10 = int_to_ptr.vmem [resolvable:$false] %s633_s10 }
  0x22   : > { %s635_s11 = scalar_lea.vmem %s634_s10, 256  ;;  %p636_p11 = scmp.lt.s32.totalorder %s817_s14, %s634_s10 }
  0x23   : > { %p631_p4 = pnand %p629_p2, %p615_p3  ;;  %p637_p5 = scmp.lt.s32.totalorder %s635_s11, %s628_s7 }
  0x25   : > { %p632_p12 = pneg %p631_p4  ;;  %p638_p8 = por %p637_p5, %p636_p11 }
  0x27   : > { %p639_p9 = pnand %p638_p8, %p632_p12 }
  0x29   : > { %642 = shalt.err (!%p639_p9)
}
  0x2a   : > { %567 = dma.hbm_to_vmem [thread:$0]  (!%p813_p13), %s809_s12, 128, %s817_s14, %s188_s16  }
  0x2b   : > { %p940_p0 = scmp.lt.s32.totalorder %s709_s21, 3  ;;  %p941_p1 = scmp.ge.s32.totalorder %s709_s21, 1 }
  0x2d   : > { %p205_p3 = pnand %p941_p1, %p940_p0 }
  0x2e   : > { %s851_s13 = sand.u32 (!%p205_p3), 1, %s701_s19  }
  0x2f   : > { %208 = sbr.rel (%p205_p3) target bundleno = 796 (0x31c), region = 40  ;;  %s532_s17 = sshll.u32 (!%p205_p3), %s851_s13, 3 }
  0x30   : > { %s211_s23 = scalar_lea.sflag (!%p205_p3), [#allocation3], %s851_s13  ;;  %s857_s15 = scalar_lea.vmem (!%p205_p3), [#allocation2], %s532_s17 }
  0x36   : > { %688 = dma.done.wait (%p789_p6), %s211_s23, 128  }
  0x37   : > { %690 = vsyncadd (%p789_p6), %s211_s23, 4294967168  ;;  %v241_v0 = vld [vmem:[%s857_s15] sm:$0xf]  ;;  %v242_v1 = vld [vmem:[%s857_s15 + $0x4] sm:$0xf]  ;;  %vm244_vm0 = vcmask 1043456   ;;  %v252_v6 = vlaneseq }
  0x38   : > { %v243_v2 = vadd.f32 %v242_v1, %v241_v0  ;;  %v712_v4 = vmov 0.0   ;;  %v249_v5 = vld [vmem:[%s929_s1] sm:$0xf]  ;;  %vm713_vm1 = vmmov 0   ;;  %vm258_vm2 = vcmask 31744   ;;  %s545_s7 = sshll.u32 %s767_s22, 7 }
  0x39   : > { %550 = vmatprep.subr.mxu0 %v712_v4  ;;  %555 = vmatprep.subr.mxu1 %v712_v4  ;;  %v253_v7 = vand.u32 127, %v252_v6  ;;  %v255_v8 = vshrl.u32 %v252_v6, 7  ;;  %v335_v13 = vld [vmem:[%s931_s3] sm:$0x3]  ;;  %vm341_vm3 = vcmask 1041408   ;;  %vm337_vm4 = vcmask 15360   ;;  %s884_s12 = scalar_lea.hbm %s933_s5, %s545_s7 }
  0x3a   : > { %v245_v3 = vsel %vm244_vm0, %v243_v2, 0.0  ;;  %551 = vmatpush3.msk.msra.mxu0 %vm244_vm0, %v249_v5  ;;  %552 = vmatprep.mubr.msk.f32.mxu0 %vm713_vm1, %v712_v4  ;;  %v250_v14 = vld [vmem:[%s930_s2] sm:$0x1]  ;;  %v714_v29 = vmov 839922192   ;;  %s240_s9 = scalar_lea.vmem [#allocation5], %s532_s17 }
  0x3b   : > { %246 = vadd.xlane.f32.xlu0 %v245_v3  ;;  %557 = vmatprep.mubr.msk.f32.mxu1 %vm713_vm1, %v712_v4  ;;  %v256_v9 = vsub.s32 %v253_v7, %v255_v8  ;;  %v336_v19 = vld [vmem:[%s932_s4] sm:$0x1]  ;;  %v424_v26 = vsub.s32 0, %v255_v8  ;;  %v431_v30 = vunpack.c.l.s4 %v714_v29  ;;  %s455_s10 = sshll.u32 %s240_s9, 4  ;;  %s441_s14 = scalar_lea.sflag [#allocation4], %s851_s13  ;;  %s886_s10 = int_to_ptr.vmem [resolvable:$true] %s455_s10 }
  0x3c   : > { %556 = vmatpush3.msk.msra.mxu1 %vm341_vm3, %v335_v13  ;;  %v421_v33 = vld [vmem:[%s857_s15] sm:$0xff]  ;;  %s643_s15 = scalar_lea.vmem %s886_s10, 128  ;;  %p942_p11 = scmp.ne.s32.totalorder %s937_s30, 0 }
  0x3d   : > { %v432_v31 = vunpack.c.0.s8 %v431_v30  ;;  %p644_p6 = scmp.ne.s32.totalorder %s886_s10, %s643_s15  ;;  %s715_s22 = smov [#allocation5]  }
  0x3e   : > { %s647_s17 = sshll.u32 %s715_s22, 4  ;;  %s648_s17 = int_to_ptr.vmem [resolvable:$false] %s647_s17 }
  0x3f   : > { %v435_v32 = vsub.s32 %v432_v31, %v255_v8  ;;  %p645_p12 = pnand %p644_p6, %p942_p11  ;;  %s649_s29 = scalar_lea.vmem %s648_s17, 256 }
  0x40   : > { %p650_p7 = scmp.lt.s32.totalorder %s886_s10, %s648_s17  ;;  %p651_p10 = scmp.lt.s32.totalorder %s649_s29, %s643_s15 }
  0x41   : > { %p646_p13 = pneg %p645_p12 }
  0x42   : > { %p652_p2 = por %p651_p10, %p650_p7 }
  0x44   : > { %p653_p4 = pnand %p652_p2, %p646_p13 }
  0xc8   : > { %v247_v10 = vpop.xlane.xlu0 %246 }
  0xc9   : > { %v248_v11 = vmul.f32 0.00390625, %v247_v10 }
  0xcb   : > { %v257_v12 = vrot.slane %v248_v11, %v256_v9 }
  0xcd   : > { %553 = vmatmul.mubr.msk.f32.vlgmr.msra.gmra.mrb[0].mxu0 %vm258_vm2, %v257_v12 }
 0x1a0   : > { %v330_v15 = vpop.f32.mrb[0].mxu0 }
 0x1a1   : > { %v331_v16 = vadd.f32 %v330_v15, %v250_v14  ;;  %v554_v17 = vpop.f32.mrb[1].mxu0 }
 0x1a3   : > { %v334_v18 = vmax.f32 %v331_v16, 0.0 }
 0x1a5   : > { %558 = vmatmul.mubr.msk.f32.vlgmr.msra.gmra.mrb[0].mxu1 %vm337_vm4, %v334_v18 }
 0x278   : > { %v411_v20 = vpop.f32.mrb[0].mxu1 }
 0x279   : > { %v412_v21 = vadd.f32 %v411_v20, %v336_v19  ;;  %v559_v22 = vpop.f32.mrb[1].mxu1 }
 0x27b   : > { %v538_v23 = vmul.f32 -1.442695, %v412_v21 }
 0x27d   : > { %609 = vpow2.f32 %v538_v23 }
 0x287   : > { %v610_v24 = vpop.eup %609 }
 0x288   : > { %v418_v25 = vadd.f32 1.0, %v610_v24 }
 0x28a   : > { %611 = vrcp.f32 %v418_v25 }
 0x294   : > { %v612_v27 = vpop.eup %611 }
 0x295   : > { %v425_v28 = vrot.slane %v612_v27, %v424_v26 }
 0x297   : > { %427 = vbcast.lane.b32.xlu0 %v425_v28, 256 }
 0x309   : > { %v428_v34 = vpop.permute.xlu0 %427 }
 0x30a   : > { %v436_v35 = vrot.slane %v428_v34, %v435_v32 }
 0x30c   : > { %v438_v36 = vmul.f32 %v436_v35, %v421_v33 }
 0x30e   : > { %439 = vst [vmem:[%s240_s9] sm:$0xff] %v438_v36 }
 0x30f   : > { %656 = shalt.err (!%p653_p4)
}
 0x310   : > { %s657_s13 = scalar_lea.hbm %s884_s12, 128  ;;  %s661_s26 = scalar_lea.hbm %s933_s5, 256 }
 0x311   : > { %p658_p5 = scmp.ne.s32.totalorder %s884_s12, %s657_s13  ;;  %p662_p0 = scmp.lt.u32.totalorder %s884_s12, %s933_s5 }
 0x312   : > { %p663_p1 = scmp.lt.u32.totalorder %s661_s26, %s657_s13  ;;  %p665_p6 = scmp.lt.u32.totalorder %s657_s13, %s884_s12 }
 0x313   : > { %p659_p8 = pnand %p658_p5, %p942_p11 }
 0x314   : > { %p664_p3 = por %p663_p1, %p662_p0 }
 0x315   : > { %p660_p9 = pneg %p659_p8 }
 0x316   : > { %p666_p12 = por %p665_p6, %p664_p3 }
 0x318   : > { %p667_p13 = pnand %p666_p12, %p660_p9 }
 0x31a   : > { %670 = shalt.err (!%p667_p13)
}
 0x31b   : > { %562 = dma.vmem_to_hbm [thread:$0]  (%p942_p11), %s886_s10, 128, %s884_s12, %s441_s14  }
 0x31c PF: > { %s467_s7 = sand.u32 1, %s697_s18   ;;  %p943_p7 = scmp.ne.s32.totalorder %s938_s6, 0 }
 0x31d   : > { %p944_p10 = scmp.ge.s32.totalorder %s709_s21, 2  ;;  %s468_s9 = scalar_lea.sflag [#allocation4], %s467_s7 }
 0x31f   : > { %p569_p2 = pnand %p944_p10, %p943_p7 }
 0x321   : > { %692 = dma.done.wait (!%p569_p2), %s468_s9, 128  }
 0x322   : > { %694 = vsyncadd (!%p569_p2), %s468_s9, 4294967168  ;;  %p18_p4 = scmp.ge.s32.totalorder %s771_s24, 4   ;;  %s945_s18 = smov %s701_s19 }
 0x323   : > { %s946_s19 = smov %s705_s20  ;;  %s947_s20 = smov %s783_s27 }
 0x324   : > { %s948_s21 = smov %s771_s24  ;;  %20 = sbr.rel (!%p18_p4) target bundleno = 5 (0x5), region = 85 }
 0x32b   :  { %473 = vsyncpa [#allocation3], 1 }
 0x32c   :  { %475 = vsyncpa [#allocation3 + $0x1], 1 }
 0x32d   :  { %476 = vsyncpa [#allocation4], 1 }
 0x32e   :  { %478 = vsyncpa [#allocation4 + $0x1], 1 }

</bundles_post_ra>
